<compile_context>
chip_gen: v7x
topology: tpu7x:2x2x1
jax: 0.10.0
libtpu: 0.0.40
codegen_flags: <defaults>
</compile_context>

<pallas_src>
import numpy as np
import jax
import jax.numpy as jnp
from jax.experimental import pallas as pl
from jax.experimental.pallas import tpu as pltpu


def softplus_inverse(x):
    return x + np.log(-np.expm1(-x))


def make_phys_rbf_params(low=0.0, high=10.0, num_gaussians=64):
    """Deterministic parameter construction, mirroring PhysRBFLayer.__init__."""
    center = softplus_inverse(np.linspace(1.0, np.exp(-high), num_gaussians))
    width_val = softplus_inverse((0.5 / ((1.0 - np.exp(-high)) / num_gaussians)) ** 2)
    width = np.full((num_gaussians,), width_val)
    return (
        jnp.asarray(center, dtype=jnp.float32),
        jnp.asarray(width, dtype=jnp.float32),
    )


def _rbf_kernel(r_ref, cw_ref, out_ref):
    # r_ref:   (BP, 2)    two consecutive distances per packed output row
    # cw_ref:  (2, 128)   row 0 = softplus(center) tiled x2, row 1 = width tiled x2
    # out_ref: (BP, 128)  lane-dense packed output (rows 2p and 2p+1 side by side)
    half = out_ref.shape[1] // 2                     # = K = 64

    er2 = jnp.exp(-r_ref[...])                       # (BP, 2)  -- EUP, tiny
    sp_c = cw_ref[0:1, :]                            # (1, 128)
    w = cw_ref[1:2, :]                               # (1, 128)

    # Replicate exp(-r[2p]) across lanes [0,64) and exp(-r[2p+1]) across [64,128).
    lane = jax.lax.broadcasted_iota(jnp.int32, out_ref.shape, 1)
    er = jnp.where(lane < half, er2[:, 0:1], er2[:, 1:2])   # (BP, 128)

    diff = er - sp_c
    out_ref[...] = jnp.exp(-w * (diff * diff))       # one exp per output element


def phys_rbf_layer(r, center, width, *, block_rows=2048):
    """r: (N,) float -> (N, K) float32 RBF expansion.  Requires K == 64."""
    n = r.shape[0]
    k = center.shape[0]
    assert k == 64 and width.shape[0] == k, "lane-packing assumes num_gaussians == 64"

    r = r.astype(jnp.float32)

    # Hoist softplus(center) out of the kernel; fuse center/width into one
    # (2, 128) constant, each half-lane group holding the same K=64 values.
    sp_c = jax.nn.softplus(center.astype(jnp.float32))
    c128 = jnp.concatenate([sp_c, sp_c]).reshape(1, 2 * k)
    w128 = jnp.concatenate([width.astype(jnp.float32),
                            width.astype(jnp.float32)]).reshape(1, 2 * k)
    cw = jnp.concatenate([c128, w128], axis=0)                    # (2, 128)

    # Pack two consecutive distances per 128-lane output row; pad N as needed.
    n_half = pl.cdiv(n, 2)                                        # packed rows
    bp = min(block_rows, n_half)
    bp = max(8, ((bp + 7) // 8) * 8)                              # sublane-aligned
    n_half_pad = pl.cdiv(n_half, bp) * bp
    n_pad = 2 * n_half_pad

    r_p = jnp.pad(r, (0, n_pad - n)) if n_pad != n else r
    r2 = r_p.reshape(n_half_pad, 2)                               # row p = [r[2p], r[2p+1]]

    grid = (n_half_pad // bp,)
    out_packed = pl.pallas_call(
        _rbf_kernel,
        out_shape=jax.ShapeDtypeStruct((n_half_pad, 2 * k), jnp.float32),
        grid_spec=pltpu.PrefetchScalarGridSpec(
            num_scalar_prefetch=0,
            grid=grid,
            in_specs=[
                pl.BlockSpec((bp, 2), lambda i: (i, 0)),
                pl.BlockSpec((2, 2 * k), lambda i: (0, 0)),
            ],
            out_specs=pl.BlockSpec((bp, 2 * k), lambda i: (i, 0)),
        ),
        compiler_params=pltpu.CompilerParams(
            dimension_semantics=("parallel",)
        ),
    )(r2, cw)

    out = out_packed.reshape(n_pad, k)                            # free row-major view
    return out[:n] if n_pad != n else out


def phys_rbf_reference(r, center, width):
    """Pure-JAX reference matching the PyTorch forward."""
    sp_c = jax.nn.softplus(center)
    diff = jnp.exp(-r[..., None]) - sp_c
    return jnp.exp(-width * diff ** 2)


if __name__ == "__main__":
    num_gaussians = 64
    n_edges = 200  # small synthetic edge count (exercises the padding path)

    center, width = make_phys_rbf_params(low=0.0, high=10.0,
                                         num_gaussians=num_gaussians)

    key = jax.random.PRNGKey(0)
    # interatomic distances, positive
    r = jax.random.uniform(key, (n_edges,), dtype=jnp.float32,
                           minval=0.1, maxval=10.0)

    out = phys_rbf_layer(r, center, width)
    out = jax.block_until_ready(out)

    ref = phys_rbf_reference(r, center, width)
    np.testing.assert_allclose(np.asarray(out), np.asarray(ref),
                               rtol=1e-5, atol=1e-6)

    print("KERNEL_OK")
</pallas_src>

<mosaic_0001>
module attributes {stable_mosaic.version = 11 : i64} {
  func.func @_rbf_kernel(%arg0: i32, %arg1: memref<104x2xf32, #tpu.memory_space<vmem>>, %arg2: memref<2x128xf32, #tpu.memory_space<vmem>>, %arg3: memref<104x128xf32, #tpu.memory_space<vmem>>) attributes {dimension_semantics = [#tpu.dimension_semantics<parallel>], iteration_bounds = array<i64: 1>, scalar_prefetch = 0 : i64, scratch_operands = 0 : i64, tpu.core_type = #tpu.core_type<tc>, window_params = [{transform_indices = @transform_0, window_bounds = array<i64: 104, 2>}, {pipeline_mode = #tpu.pipeline_mode<synchronous>, transform_indices = @transform_1, window_bounds = array<i64: 2, 128>}, {transform_indices = @transform_2, window_bounds = array<i64: 104, 128>}]} {
    %c0 = arith.constant 0 : index
    %c0_0 = arith.constant 0 : index
    %0 = vector.load %arg1[%c0, %c0_0] : memref<104x2xf32, #tpu.memory_space<vmem>>, vector<104x2xf32>
    %cst = arith.constant 0.000000e+00 : f32
    %1 = vector.broadcast %cst : f32 to vector<104x2xf32>
    %2 = arith.subf %1, %0 : vector<104x2xf32>
    %3 = math.exp %2 : vector<104x2xf32>
    %c0_1 = arith.constant 0 : index
    %c0_2 = arith.constant 0 : index
    %4 = vector.load %arg2[%c0_1, %c0_2] : memref<2x128xf32, #tpu.memory_space<vmem>>, vector<1x128xf32>
    %c1 = arith.constant 1 : index
    %c0_3 = arith.constant 0 : index
    %5 = vector.load %arg2[%c1, %c0_3] : memref<2x128xf32, #tpu.memory_space<vmem>>, vector<1x128xf32>
    %6 = tpu.iota {dimensions = array<i32: 1>} : vector<104x128xi32>
    %c64_i32 = arith.constant 64 : i32
    %7 = vector.broadcast %c64_i32 : i32 to vector<104x128xi32>
    %8 = arith.cmpi slt, %6, %7 : vector<104x128xi32>
    %9 = vector.extract_strided_slice %3 {offsets = [0, 0], sizes = [104, 1], strides = [1, 1]} : vector<104x2xf32> to vector<104x1xf32>
    %10 = vector.extract_strided_slice %3 {offsets = [0, 1], sizes = [104, 1], strides = [1, 1]} : vector<104x2xf32> to vector<104x1xf32>
    %11 = vector.shape_cast %9 : vector<104x1xf32> to vector<104x1xf32>
    %12 = vector.broadcast %11 : vector<104x1xf32> to vector<104x128xf32>
    %13 = vector.shape_cast %10 : vector<104x1xf32> to vector<104x1xf32>
    %14 = vector.broadcast %13 : vector<104x1xf32> to vector<104x128xf32>
    %15 = arith.select %8, %12, %14 : vector<104x128xi1>, vector<104x128xf32>
    %16 = vector.broadcast %4 : vector<1x128xf32> to vector<104x128xf32>
    %17 = arith.subf %15, %16 : vector<104x128xf32>
    %cst_4 = arith.constant 0.000000e+00 : f32
    %18 = vector.broadcast %cst_4 : f32 to vector<1x128xf32>
    %19 = arith.subf %18, %5 : vector<1x128xf32>
    %20 = arith.mulf %17, %17 : vector<104x128xf32>
    %21 = vector.broadcast %19 : vector<1x128xf32> to vector<104x128xf32>
    %22 = arith.mulf %21, %20 : vector<104x128xf32>
    %23 = math.exp %22 : vector<104x128xf32>
    %c0_5 = arith.constant 0 : index
    %c0_6 = arith.constant 0 : index
    %24 = vector.load %arg3[%c0_5, %c0_6] : memref<104x128xf32, #tpu.memory_space<vmem>>, vector<104x128xf32>
    tpu.vector_store %arg3[%c0_5, %c0_6], %23 {strides = array<i32>} : memref<104x128xf32, #tpu.memory_space<vmem>>, vector<104x128xf32>,
    return
  }
  func.func @transform_0(%arg0: i32) -> (i32, i32) {
    %c0_i32 = arith.constant 0 : i32
    %c0_i32_0 = arith.constant 0 : i32
    return %arg0, %c0_i32 : i32, i32
  }
  func.func @transform_1(%arg0: i32) -> (i32, i32) {
    %c0_i32 = arith.constant 0 : i32
    %c0_i32_0 = arith.constant 0 : i32
    %c0_i32_1 = arith.constant 0 : i32
    return %c0_i32, %c0_i32_0 : i32, i32
  }
  func.func @transform_2(%arg0: i32) -> (i32, i32) {
    %c0_i32 = arith.constant 0 : i32
    %c0_i32_0 = arith.constant 0 : i32
    return %arg0, %c0_i32 : i32, i32
  }
}

</mosaic_0001>

<bundles_post_ra>
// kernel: tpu_custom_call.1
= control target key start
LH: loop header
LB: loop body
LE: loop exit
PB: predicated region body
PF: predicated region fallthrough
CT: control target
= control target key end

     0   :  { %v388_v3 = vmov 0   ;;  %s536_s0 = inlined_call_operand.vmem [shape: f32[104,2], index: 0, kind: input, shape index: {}]   ;;  %s537_s1 = inlined_call_operand.vmem [shape: f32[2,128], index: 1, kind: input, shape index: {}]   ;;  %s538_s2 = inlined_call_operand.hbm [shape: f32[104,128], index: 2, kind: output, shape index: {}]  }
   0x1   :  { %v14_v0 = vld [vmem:[%s536_s0 + $0x10] sm:$0xff]  ;;  %v12_v1 = vld [vmem:[%s536_s0] sm:$0xff]  ;;  %v15_v2 = vld [vmem:[%s536_s0 + $0x18] sm:$0xff]  ;;  %309 = vset.pattern.permute.xlu1 %v388_v3  ;;  %308 = vset.pattern.permute.xlu0 %v388_v3 }
   0x2   :  { %v27_v4 = vsub.f32 0.0, %v14_v0  ;;  %v25_v5 = vsub.f32 0.0, %v12_v1  ;;  %v28_v6 = vsub.f32 0.0, %v15_v2  ;;  %v13_v7 = vld [vmem:[%s536_s0 + $0x8] sm:$0xff]  ;;  %v16_v9 = vld [vmem:[%s536_s0 + $0x20] sm:$0xff]  ;;  %v19_v17 = vld [vmem:[%s536_s0 + $0x38] sm:$0xff] }
   0x3   :  { %v17_v8 = vld [vmem:[%s536_s0 + $0x28] sm:$0xff]  ;;  %v26_v10 = vsub.f32 0.0, %v13_v7  ;;  %v29_v16 = vsub.f32 0.0, %v16_v9  ;;  %v18_v18 = vld [vmem:[%s536_s0 + $0x30] sm:$0xff] }
   0x4   :  { %v30_v11 = vsub.f32 0.0, %v17_v8  ;;  %v42_v12 = vmul.f32 1.442695, %v27_v4  ;;  %v38_v13 = vmul.f32 1.442695, %v25_v5 }
   0x5   :  { %v44_v14 = vmul.f32 1.442695, %v28_v6  ;;  %v40_v15 = vmul.f32 1.442695, %v26_v10 }
   0x6   :  { %312 = vpow2.f32 %v42_v12 }
   0x7   :  { %314 = vpow2.f32 %v38_v13 }
   0x8   :  { %7 = vsyncpa [#allocation3], 0  ;;  %316 = vpow2.f32 %v44_v14  ;;  %v48_v19 = vmul.f32 1.442695, %v30_v11  ;;  %v32_v20 = vsub.f32 0.0, %v19_v17  ;;  %v31_v22 = vsub.f32 0.0, %v18_v18 }
   0x9   :  { %318 = vpow2.f32 %v40_v15  ;;  %v46_v21 = vmul.f32 1.442695, %v29_v16  ;;  %v21_v23 = vld [vmem:[%s536_s0 + $0x48] sm:$0xff]  ;;  %v20_v24 = vld [vmem:[%s536_s0 + $0x40] sm:$0xff]  ;;  %v23_v29 = vld [vmem:[%s536_s0 + $0x58] sm:$0xff]  ;;  %v389_v53 = vmov 1   ;;  %v66_v62 = vlaneseq }
   0xa   :  { %320 = vpow2.f32 %v48_v19  ;;  %v52_v25 = vmul.f32 1.442695, %v32_v20  ;;  %v34_v26 = vsub.f32 0.0, %v21_v23  ;;  %v50_v27 = vmul.f32 1.442695, %v31_v22  ;;  %v22_v30 = vld [vmem:[%s536_s0 + $0x50] sm:$0xff] }
   0xb   :  { %322 = vpow2.f32 %v46_v21  ;;  %v33_v28 = vsub.f32 0.0, %v20_v24  ;;  %v36_v33 = vsub.f32 0.0, %v23_v29  ;;  %v35_v36 = vsub.f32 0.0, %v22_v30  ;;  %v24_v38 = vld [vmem:[%s536_s0 + $0x60] sm:$0xff] }
   0xc   :  { %324 = vpow2.f32 %v52_v25  ;;  %v56_v32 = vmul.f32 1.442695, %v34_v26  ;;  %v37_v42 = vsub.f32 0.0, %v24_v38  ;;  %v449_v1 = vand.u32 127, %v66_v62  ;;  %v65_v4 = vld [vmem:[%s537_s1 + $0x1] sm:$0x1] }
   0xd   :  { %326 = vpow2.f32 %v50_v27  ;;  %v54_v35 = vmul.f32 1.442695, %v33_v28  ;;  %v60_v40 = vmul.f32 1.442695, %v36_v33  ;;  %v58_v41 = vmul.f32 1.442695, %v35_v36 }
   0xe   :  { %328 = vpow2.f32 %v56_v32  ;;  %v62_v45 = vmul.f32 1.442695, %v37_v42  ;;  %v231_v2 = vshrl.u32 %v66_v62, 7  ;;  %vm68_vm0 = vcmp.lt.s32.totalorder %v449_v1, 64  ;;  %v462_v8 = vld [vmem:[%s537_s1] ss:$0 sm:$0xff] }
   0xf   :  { %330 = vpow2.f32 %v54_v35  ;;  %v216_v6 = vsub.f32 0.0, %v65_v4  ;;  %s390_s1 = smov [#allocation2]  }
  0x10   :  { %v313_v31 = vpop.eup %312  ;;  %332 = vpow2.f32 %v60_v40  ;;  %v232_v7 = vsub.s32 0, %v231_v2  ;;  %s291_s10 = sshll.u32 %s390_s1, 4  ;;  %s292_s10 = int_to_ptr.vmem [resolvable:$true] %s291_s10 }
  0x11   :  { %v315_v34 = vpop.eup %314  ;;  %81 = vperm.xlu1 %309, %v313_v31   ;;  %334 = vpow2.f32 %v58_v41  ;;  %s364_s11 = scalar_lea.vmem %s292_s10, 1664  ;;  %p369_p1 = scmp.lt.s32.totalorder %s292_s10, %s292_s10 }
  0x12   :  { %v317_v37 = vpop.eup %316  ;;  %71 = vperm.xlu0 %308, %v315_v34   ;;  %336 = vpow2.f32 %v62_v45  ;;  %v468_v12 = vrot.slane %v216_v6, %v232_v7  ;;  %p365_p0 = scmp.ne.s32.totalorder %s292_s10, %s364_s11  ;;  %p370_p2 = scmp.lt.s32.totalorder %s364_s11, %s364_s11 }
  0x13   :  { %v319_v39 = vpop.eup %318 }
  0x14   :  { %v321_v43 = vpop.eup %320  ;;  %p371_p3 = por %p370_p2, %p369_p1 }
  0x15   :  { %86 = vperm.xlu1 %309, %v317_v37   ;;  %v323_v44 = vpop.eup %322 }
  0x16   :  { %76 = vperm.xlu0 %308, %v319_v39   ;;  %v325_v46 = vpop.eup %324  ;;  %p372_p4 = pnand %p371_p3, %p365_p0 }
  0x17   :  { %v327_v47 = vpop.eup %326 }
  0x18   :  { %v329_v48 = vpop.eup %328 }
  0x19   :  { %96 = vperm.xlu1 %309, %v321_v43   ;;  %v331_v49 = vpop.eup %330 }
  0x1a   :  { %91 = vperm.xlu0 %308, %v323_v44   ;;  %v333_v50 = vpop.eup %332 }
  0x1b   :  { %v335_v51 = vpop.eup %334 }
  0x1c   :  { %v337_v52 = vpop.eup %336 }
  0x1d   :  { %106 = vperm.xlu1 %309, %v325_v46  }
  0x1e   :  { %101 = vperm.xlu0 %308, %v327_v47  }
  0x21   :  { %116 = vperm.xlu1 %309, %v329_v48  }
  0x22   :  { %111 = vperm.xlu0 %308, %v331_v49  }
  0x25   :  { %126 = vperm.xlu1 %309, %v333_v50  }
  0x26   :  { %121 = vperm.xlu0 %308, %v335_v51  }
  0x29   :  { %310 = vset.pattern.permute.xlu1 %v389_v53 }
  0x2a   :  { %131 = vperm.xlu0 %308, %v337_v52   ;;  %135 = vperm.xlu1 %310, %v315_v34  }
  0x2e   :  { %311 = vset.pattern.permute.xlu0 %v389_v53  ;;  %143 = vperm.xlu1 %310, %v313_v31  }
  0x2f   :  { %139 = vperm.xlu0 %311, %v319_v39  }
  0x32   :  { %147 = vperm.xlu1 %310, %v317_v37  }
  0x33   :  { %151 = vperm.xlu0 %311, %v323_v44  }
  0x36   :  { %155 = vperm.xlu1 %310, %v321_v43  }
  0x37   :  { %159 = vperm.xlu0 %311, %v327_v47  }
  0x3a   :  { %163 = vperm.xlu1 %310, %v325_v46  }
  0x3b   :  { %167 = vperm.xlu0 %311, %v331_v49  }
  0x3e   :  { %171 = vperm.xlu1 %310, %v329_v48  }
  0x3f   :  { %175 = vperm.xlu0 %311, %v335_v51  }
  0x42   :  { %179 = vperm.xlu1 %310, %v333_v50  }
  0x43   :  { %183 = vperm.xlu0 %311, %v337_v52  }
  0x90   :  { %v82_v54 = vpop.permute.xlu1 %81 }
  0x91   :  { %v72_v55 = vpop.permute.xlu0 %71 }
  0x94   :  { %v87_v56 = vpop.permute.xlu1 %86 }
  0x95   :  { %v77_v57 = vpop.permute.xlu0 %76 }
  0x98   :  { %v97_v58 = vpop.permute.xlu1 %96 }
  0x99   :  { %v92_v59 = vpop.permute.xlu0 %91 }
  0x9c   :  { %v107_v60 = vpop.permute.xlu1 %106 }
  0x9d   :  { %v102_v61 = vpop.permute.xlu0 %101 }
  0xa0   :  { %v447_v63 = vpop.permute.xlu1 %116 }
  0xa1   :  { %v112_v0 = vpop.permute.xlu0 %111 }
  0xa4   :  { %v451_v3 = vpop.permute.xlu1 %126 }
  0xa5   :  { %v456_v5 = vpop.permute.xlu0 %121 }
  0xa9   :  { %v464_v9 = vpop.permute.xlu0 %131  ;;  %v136_v10 = vpop.permute.xlu1 %135 }
  0xaa   :  { %v186_v11 = vsel %vm68_vm0, %v72_v55, %v136_v10 }
  0xab   :  { %v203_v13 = vsub.f32 %v186_v11, %v462_v8 }
  0xad   :  { %v217_v14 = vmul.f32 %v203_v13, %v203_v13  ;;  %v144_v15 = vpop.permute.xlu1 %143 }
  0xae   :  { %v188_v16 = vsel %vm68_vm0, %v82_v54, %v144_v15  ;;  %v140_v17 = vpop.permute.xlu0 %139 }
  0xaf   :  { %v234_v18 = vmul.f32 %v468_v12, %v217_v14  ;;  %v205_v19 = vsub.f32 %v188_v16, %v462_v8  ;;  %v187_v20 = vsel %vm68_vm0, %v77_v57, %v140_v17 }
  0xb0   :  { %v204_v21 = vsub.f32 %v187_v20, %v462_v8 }
  0xb1   :  { %v247_v22 = vmul.f32 1.442695, %v234_v18  ;;  %v219_v23 = vmul.f32 %v205_v19, %v205_v19  ;;  %v148_v24 = vpop.permute.xlu1 %147 }
  0xb2   :  { %v218_v25 = vmul.f32 %v204_v21, %v204_v21  ;;  %v189_v26 = vsel %vm68_vm0, %v87_v56, %v148_v24  ;;  %v152_v27 = vpop.permute.xlu0 %151 }
  0xb3   :  { %338 = vpow2.f32 %v247_v22  ;;  %v236_v28 = vmul.f32 %v468_v12, %v219_v23  ;;  %v206_v29 = vsub.f32 %v189_v26, %v462_v8  ;;  %v190_v30 = vsel %vm68_vm0, %v92_v59, %v152_v27 }
  0xb4   :  { %v235_v31 = vmul.f32 %v468_v12, %v218_v25  ;;  %v207_v32 = vsub.f32 %v190_v30, %v462_v8 }
  0xb5   :  { %v251_v33 = vmul.f32 1.442695, %v236_v28  ;;  %v220_v34 = vmul.f32 %v206_v29, %v206_v29  ;;  %v156_v35 = vpop.permute.xlu1 %155 }
  0xb6   :  { %v249_v36 = vmul.f32 1.442695, %v235_v31  ;;  %v221_v37 = vmul.f32 %v207_v32, %v207_v32  ;;  %v191_v38 = vsel %vm68_vm0, %v97_v58, %v156_v35  ;;  %v160_v39 = vpop.permute.xlu0 %159 }
  0xb7   :  { %340 = vpow2.f32 %v251_v33  ;;  %v237_v40 = vmul.f32 %v468_v12, %v220_v34  ;;  %v208_v41 = vsub.f32 %v191_v38, %v462_v8  ;;  %v192_v42 = vsel %vm68_vm0, %v102_v61, %v160_v39 }
  0xb8   :  { %342 = vpow2.f32 %v249_v36  ;;  %v238_v43 = vmul.f32 %v468_v12, %v221_v37  ;;  %v209_v44 = vsub.f32 %v192_v42, %v462_v8 }
  0xb9   :  { %v253_v45 = vmul.f32 1.442695, %v237_v40  ;;  %v222_v46 = vmul.f32 %v208_v41, %v208_v41  ;;  %v164_v47 = vpop.permute.xlu1 %163 }
  0xba   :  { %v255_v48 = vmul.f32 1.442695, %v238_v43  ;;  %v223_v49 = vmul.f32 %v209_v44, %v209_v44  ;;  %v193_v50 = vsel %vm68_vm0, %v107_v60, %v164_v47  ;;  %v168_v51 = vpop.permute.xlu0 %167 }
  0xbb   :  { %344 = vpow2.f32 %v253_v45  ;;  %v239_v52 = vmul.f32 %v468_v12, %v222_v46  ;;  %v210_v53 = vsub.f32 %v193_v50, %v462_v8  ;;  %v194_v54 = vsel %vm68_vm0, %v112_v0, %v168_v51 }
  0xbc   :  { %346 = vpow2.f32 %v255_v48  ;;  %v240_v55 = vmul.f32 %v468_v12, %v223_v49  ;;  %v211_v56 = vsub.f32 %v194_v54, %v462_v8 }
  0xbd   :  { %v339_v57 = vpop.eup %338  ;;  %v257_v58 = vmul.f32 1.442695, %v239_v52  ;;  %v224_v59 = vmul.f32 %v210_v53, %v210_v53  ;;  %v172_v61 = vpop.permute.xlu1 %171 }
  0xbe   :  { %273 = vst [vmem:[#allocation2] sm:$0xff] %v339_v57  ;;  %v259_v60 = vmul.f32 1.442695, %v240_v55  ;;  %v225_v62 = vmul.f32 %v211_v56, %v211_v56  ;;  %v195_v2 = vsel %vm68_vm0, %v447_v63, %v172_v61  ;;  %v176_v4 = vpop.permute.xlu0 %175 }
  0xbf   :  { %348 = vpow2.f32 %v257_v58  ;;  %v241_v0 = vmul.f32 %v468_v12, %v224_v59  ;;  %v212_v6 = vsub.f32 %v195_v2, %v462_v8  ;;  %v196_v7 = vsel %vm68_vm0, %v456_v5, %v176_v4 }
  0xc0   :  { %350 = vpow2.f32 %v259_v60  ;;  %v242_v10 = vmul.f32 %v468_v12, %v225_v62  ;;  %v213_v11 = vsub.f32 %v196_v7, %v462_v8 }
  0xc1   :  { %v341_v13 = vpop.eup %340  ;;  %v261_v14 = vmul.f32 1.442695, %v241_v0  ;;  %v226_v15 = vmul.f32 %v212_v6, %v212_v6  ;;  %v180_v16 = vpop.permute.xlu1 %179 }
  0xc2   :  { %v343_v63 = vpop.eup %342  ;;  %275 = vst [vmem:[#allocation2 + $0x10] sm:$0xff] %v341_v13  ;;  %v263_v17 = vmul.f32 1.442695, %v242_v10  ;;  %v227_v18 = vmul.f32 %v213_v11, %v213_v11  ;;  %v197_v19 = vsel %vm68_vm0, %v451_v3, %v180_v16  ;;  %v184_v20 = vpop.permute.xlu0 %183 }
  0xc3   :  { %274 = vst [vmem:[#allocation2 + $0x8] sm:$0xff] %v343_v63  ;;  %352 = vpow2.f32 %v261_v14  ;;  %v243_v5 = vmul.f32 %v468_v12, %v226_v15  ;;  %v214_v21 = vsub.f32 %v197_v19, %v462_v8  ;;  %v198_v22 = vsel %vm68_vm0, %v464_v9, %v184_v20 }
  0xc4   :  { %354 = vpow2.f32 %v263_v17  ;;  %v244_v23 = vmul.f32 %v468_v12, %v227_v18  ;;  %v215_v24 = vsub.f32 %v198_v22, %v462_v8 }
  0xc5   :  { %v345_v25 = vpop.eup %344  ;;  %v265_v26 = vmul.f32 1.442695, %v243_v5  ;;  %v228_v27 = vmul.f32 %v214_v21, %v214_v21 }
  0xc6   :  { %v347_v3 = vpop.eup %346  ;;  %276 = vst [vmem:[#allocation2 + $0x18] sm:$0xff] %v345_v25  ;;  %v267_v28 = vmul.f32 1.442695, %v244_v23  ;;  %v229_v29 = vmul.f32 %v215_v24, %v215_v24 }
  0xc7   :  { %277 = vst [vmem:[#allocation2 + $0x20] sm:$0xff] %v347_v3  ;;  %356 = vpow2.f32 %v265_v26  ;;  %v245_v30 = vmul.f32 %v468_v12, %v228_v27 }
  0xc8   :  { %358 = vpow2.f32 %v267_v28  ;;  %v246_v1 = vmul.f32 %v468_v12, %v229_v29 }
  0xc9   :  { %v349_v9 = vpop.eup %348  ;;  %v269_v31 = vmul.f32 1.442695, %v245_v30 }
  0xca   :  { %v351_v32 = vpop.eup %350  ;;  %278 = vst [vmem:[#allocation2 + $0x28] sm:$0xff] %v349_v9  ;;  %v271_v33 = vmul.f32 1.442695, %v246_v1 }
  0xcb   :  { %279 = vst [vmem:[#allocation2 + $0x30] sm:$0xff] %v351_v32  ;;  %360 = vpow2.f32 %v269_v31 }
  0xcc   :  { %362 = vpow2.f32 %v271_v33 }
  0xcd   :  { %v353_v8 = vpop.eup %352 }
  0xce   :  { %v355_v34 = vpop.eup %354  ;;  %280 = vst [vmem:[#allocation2 + $0x38] sm:$0xff] %v353_v8 }
  0xcf   :  { %281 = vst [vmem:[#allocation2 + $0x40] sm:$0xff] %v355_v34 }
  0xd1   :  { %v357_v35 = vpop.eup %356 }
  0xd2   :  { %v359_v36 = vpop.eup %358  ;;  %282 = vst [vmem:[#allocation2 + $0x48] sm:$0xff] %v357_v35 }
  0xd3   :  { %283 = vst [vmem:[#allocation2 + $0x50] sm:$0xff] %v359_v36 }
  0xd5   :  { %v361_v12 = vpop.eup %360 }
  0xd6   :  { %v363_v37 = vpop.eup %362  ;;  %284 = vst [vmem:[#allocation2 + $0x58] sm:$0xff] %v361_v12 }
  0xd7   :  { %285 = vst [vmem:[#allocation2 + $0x60] sm:$0xff] %v363_v37 }
  0xd8   :  { %375 = shalt.err (!%p372_p4)
}
  0xd9   :  { %s376_s14 = scalar_lea.hbm %s538_s2, 1664 }
  0xda   :  { %p377_p5 = scmp.ne.s32.totalorder %s538_s2, %s376_s14  ;;  %p380_p6 = scmp.lt.u32.totalorder %s376_s14, %s538_s2 }
  0xdc   :  { %p382_p7 = pnand %p380_p6, %p377_p5 }
  0xde   :  { %385 = shalt.err (!%p382_p7)
}
  0xdf   :  { %s391_s19 = smov 128   ;;  %s392_s20 = smov 8  }
  0xe0   :  { %297 = dma.vmem_to_hbm [thread:$0]  %s292_s10, 1664, %s538_s2, [#allocation3], %s391_s19, %s391_s19, %s392_s20  }
  0xe1   :  { %386 = dma.done.wait [#allocation3], 1664  }
  0xe2   :  { %387 = vsyncadd [#allocation3], 4294965632 }
  0xe3   :  { %301 = vsyncpa [#allocation3], 1 }

</bundles_post_ra>
